<compile_context>
chip_gen: v5e
topology: v5e:2x2
jax: 0.10.0
libtpu: 0.0.40
codegen_flags: <defaults>
</compile_context>

<pallas_src>
import jax
import jax.numpy as jnp
from jax.experimental import pallas as pl
from jax.experimental.pallas import tpu as pltpu


def ffn_kernel(x_ref, w1_ref, b1_ref, w2_ref, b2_ref, o_ref):
    # x_ref: (bm, d_model) in the caller dtype; w1/w2 are resident bf16;
    # b1/b2 are f32 rows. bf16 only at the MXU boundary, f32 everywhere else.
    x = x_ref[...].astype(jnp.bfloat16)
    h = jnp.dot(x, w1_ref[...], preferred_element_type=jnp.float32) + b1_ref[...]
    h = jnp.maximum(h, 0.0)                       # ReLU (Dropout == identity in eval)
    o = jnp.dot(h.astype(jnp.bfloat16), w2_ref[...],
                preferred_element_type=jnp.float32) + b2_ref[...]
    o_ref[...] = o.astype(o_ref.dtype)


def _ceil_to(v, mult):
    return -(-v // mult) * mult


def feed_forward(x, w1, b1, w2, b2, *, block_m=512):
    """Fused FeedForward: relu(x @ w1 + b1) @ w2 + b2.

    x:  (..., d_model)
    w1: (d_model, d_ff)   b1: (1, d_ff)
    w2: (d_ff, d_model)   b2: (1, d_model)
    Weights are stored pre-transposed ((d_in, d_out)), so x @ w + b is
    mathematically identical to PyTorch's x @ W.T + b.
    """
    orig_shape = x.shape
    d_model = orig_shape[-1]
    d_ff = w1.shape[1]

    # Cast weights to bf16 once (MXU operands); biases stay f32 for the add.
    w1 = w1.astype(jnp.bfloat16)
    w2 = w2.astype(jnp.bfloat16)
    b1 = b1.astype(jnp.float32)
    b2 = b2.astype(jnp.float32)

    x2 = x.reshape(-1, d_model)            # fold batch/seq into matmul M rows
    m = x2.shape[0]

    # ---- choose the M tile -------------------------------------------------
    bm = min(block_m, m)
    if pl.cdiv(m, bm) < 2 and m >= 16:
        # Make sure the 'parallel' M axis has >= 2 steps so v7x's two
        # TensorCores both get work (no effect on single-TC v5e/v6e).
        bm = _ceil_to(pl.cdiv(m, 2), 8)
    if bm != m:
        bm = _ceil_to(bm, 8)               # sublane-aligned -> unmasked stores
    grid = (pl.cdiv(m, bm),)               # ragged last block is masked by Pallas

    # ---- VMEM budget (derived from the actual tile footprint) --------------
    xb = x2.dtype.itemsize
    wb = 2  # bf16 weights
    f32 = 4
    vmem_need = (
        2 * bm * d_model * xb              # x double-buffer
        + 2 * bm * d_model * xb            # out double-buffer
        + bm * d_ff * f32                  # h intermediate (f32)
        + 2 * d_model * d_ff * wb          # W1 (default double-buffered)
        + 2 * d_ff * d_model * wb          # W2
        + 2 * (d_ff + d_model) * f32       # biases
    )
    try:
        phys_vmem = pltpu.get_tpu_info().vmem_capacity_bytes
    except Exception:
        phys_vmem = 64 * 1024 * 1024       # conservative (v7x per-TC)
    vmem_limit = int(min(max(2 * vmem_need, 32 * 1024 * 1024),
                         int(0.75 * phys_vmem)))

    cost = pl.CostEstimate(
        flops=int(4 * m * d_model * d_ff),         # two matmuls
        transcendentals=0,
        bytes_accessed=int(2 * m * d_model * xb
                           + 2 * d_model * d_ff * wb
                           + (d_ff + d_model) * f32),
    )

    out = pl.pallas_call(
        ffn_kernel,
        out_shape=jax.ShapeDtypeStruct((m, d_model), x.dtype),
        grid=grid,
        in_specs=[
            pl.BlockSpec((bm, d_model), lambda i: (i, 0)),    # x rows
            pl.BlockSpec((d_model, d_ff), lambda i: (0, 0)),  # W1 (resident)
            pl.BlockSpec((1, d_ff), lambda i: (0, 0)),        # b1
            pl.BlockSpec((d_ff, d_model), lambda i: (0, 0)),  # W2 (resident)
            pl.BlockSpec((1, d_model), lambda i: (0, 0)),     # b2
        ],
        out_specs=pl.BlockSpec((bm, d_model), lambda i: (i, 0)),
        compiler_params=pltpu.CompilerParams(
            dimension_semantics=("parallel",),
            vmem_limit_bytes=vmem_limit,
        ),
        cost_estimate=cost,
    )(x2, w1, b1, w2, b2)

    return out.reshape(orig_shape)


# ---------------- pure-JAX reference (for correctness check) ----------------
def feed_forward_ref(x, w1, b1, w2, b2):
    h = jnp.maximum(x @ w1 + b1, 0.0)
    return h @ w2 + b2


if __name__ == "__main__":
    # Small, module-consistent shapes (lane-dense feature dims).
    B, T = 8, 64              # batch, sequence -> M = 512 rows -> 2 grid steps
    D, DFF = 128, 256         # d_model, d_ff

    key = jax.random.PRNGKey(0)
    k1, k2, k3, k4, k5 = jax.random.split(key, 5)
    x = jax.random.normal(k1, (B, T, D), jnp.float32)
    w1 = 0.05 * jax.random.normal(k2, (D, DFF), jnp.float32)
    b1 = 0.05 * jax.random.normal(k3, (1, DFF), jnp.float32)
    w2 = 0.05 * jax.random.normal(k4, (DFF, D), jnp.float32)
    b2 = 0.05 * jax.random.normal(k5, (1, D), jnp.float32)

    out = jax.block_until_ready(feed_forward(x, w1, b1, w2, b2))
    ref = feed_forward_ref(x, w1, b1, w2, b2)

    assert out.shape == (B, T, D)
    # bf16 MXU operands -> relaxed tolerance vs. the f32 reference.
    assert jnp.allclose(out, ref, atol=2e-2, rtol=2e-2), "mismatch vs JAX reference"

    print("KERNEL_OK")
</pallas_src>

<mosaic_0001>
module attributes {stable_mosaic.version = 11 : i64} {
  func.func @ffn_kernel(%arg0: i32, %arg1: memref<256x128xf32, #tpu.memory_space<vmem>>, %arg2: memref<128x256xbf16, #tpu.memory_space<vmem>>, %arg3: memref<1x256xf32, #tpu.memory_space<vmem>>, %arg4: memref<256x128xbf16, #tpu.memory_space<vmem>>, %arg5: memref<1x128xf32, #tpu.memory_space<vmem>>, %arg6: memref<256x128xf32, #tpu.memory_space<vmem>>) attributes {dimension_semantics = [#tpu.dimension_semantics<parallel>], iteration_bounds = array<i64: 2>, scalar_prefetch = 0 : i64, scratch_operands = 0 : i64, tpu.core_type = #tpu.core_type<tc>, window_params = [{transform_indices = @transform_0, window_bounds = array<i64: 256, 128>}, {pipeline_mode = #tpu.pipeline_mode<synchronous>, transform_indices = @transform_1, window_bounds = array<i64: 128, 256>}, {pipeline_mode = #tpu.pipeline_mode<synchronous>, transform_indices = @transform_2, window_bounds = array<i64: 1, 256>}, {pipeline_mode = #tpu.pipeline_mode<synchronous>, transform_indices = @transform_3, window_bounds = array<i64: 256, 128>}, {pipeline_mode = #tpu.pipeline_mode<synchronous>, transform_indices = @transform_4, window_bounds = array<i64: 1, 128>}, {transform_indices = @transform_5, window_bounds = array<i64: 256, 128>}]} {
    %c0 = arith.constant 0 : index
    %c0_0 = arith.constant 0 : index
    %0 = vector.load %arg1[%c0, %c0_0] : memref<256x128xf32, #tpu.memory_space<vmem>>, vector<256x128xf32>
    %1 = arith.truncf %0 : vector<256x128xf32> to vector<256x128xbf16>
    %c0_1 = arith.constant 0 : index
    %c0_2 = arith.constant 0 : index
    %2 = vector.load %arg2[%c0_1, %c0_2] : memref<128x256xbf16, #tpu.memory_space<vmem>>, vector<128x256xbf16>
    %cst = arith.constant dense<0.000000e+00> : vector<256x256xf32>
    %3 = tpu.matmul %1, %2, %cst {dimension_numbers = #tpu.dot_dimension_numbers<[1], [0], [0], [1], [0, 0, 1, 1], [], []>} : vector<256x128xbf16>, vector<128x256xbf16>, vector<256x256xf32> -> vector<256x256xf32>
    %c0_3 = arith.constant 0 : index
    %c0_4 = arith.constant 0 : index
    %4 = vector.load %arg3[%c0_3, %c0_4] : memref<1x256xf32, #tpu.memory_space<vmem>>, vector<1x256xf32>
    %5 = vector.broadcast %4 : vector<1x256xf32> to vector<256x256xf32>
    %6 = arith.addf %3, %5 : vector<256x256xf32>
    %cst_5 = arith.constant 0.000000e+00 : f32
    %7 = vector.broadcast %cst_5 : f32 to vector<256x256xf32>
    %8 = arith.maximumf %6, %7 : vector<256x256xf32>
    %9 = arith.truncf %8 : vector<256x256xf32> to vector<256x256xbf16>
    %c0_6 = arith.constant 0 : index
    %c0_7 = arith.constant 0 : index
    %10 = vector.load %arg4[%c0_6, %c0_7] : memref<256x128xbf16, #tpu.memory_space<vmem>>, vector<256x128xbf16>
    %cst_8 = arith.constant dense<0.000000e+00> : vector<256x128xf32>
    %11 = tpu.matmul %9, %10, %cst_8 {dimension_numbers = #tpu.dot_dimension_numbers<[1], [0], [0], [1], [0, 0, 1, 1], [], []>} : vector<256x256xbf16>, vector<256x128xbf16>, vector<256x128xf32> -> vector<256x128xf32>
    %c0_9 = arith.constant 0 : index
    %c0_10 = arith.constant 0 : index
    %12 = vector.load %arg5[%c0_9, %c0_10] : memref<1x128xf32, #tpu.memory_space<vmem>>, vector<1x128xf32>
    %13 = vector.broadcast %12 : vector<1x128xf32> to vector<256x128xf32>
    %14 = arith.addf %11, %13 : vector<256x128xf32>
    %c0_11 = arith.constant 0 : index
    %c0_12 = arith.constant 0 : index
    %15 = vector.load %arg6[%c0_11, %c0_12] : memref<256x128xf32, #tpu.memory_space<vmem>>, vector<256x128xf32>
    tpu.vector_store %arg6[%c0_11, %c0_12], %14 {strides = array<i32>} : memref<256x128xf32, #tpu.memory_space<vmem>>, vector<256x128xf32>,
    return
  }
  func.func @transform_0(%arg0: i32) -> (i32, i32) {
    %c0_i32 = arith.constant 0 : i32
    %c0_i32_0 = arith.constant 0 : i32
    return %arg0, %c0_i32 : i32, i32
  }
  func.func @transform_1(%arg0: i32) -> (i32, i32) {
    %c0_i32 = arith.constant 0 : i32
    %c0_i32_0 = arith.constant 0 : i32
    %c0_i32_1 = arith.constant 0 : i32
    return %c0_i32, %c0_i32_0 : i32, i32
  }
  func.func @transform_2(%arg0: i32) -> (i32, i32) {
    %c0_i32 = arith.constant 0 : i32
    %c0_i32_0 = arith.constant 0 : i32
    %c0_i32_1 = arith.constant 0 : i32
    return %c0_i32, %c0_i32_0 : i32, i32
  }
  func.func @transform_3(%arg0: i32) -> (i32, i32) {
    %c0_i32 = arith.constant 0 : i32
    %c0_i32_0 = arith.constant 0 : i32
    %c0_i32_1 = arith.constant 0 : i32
    return %c0_i32, %c0_i32_0 : i32, i32
  }
  func.func @transform_4(%arg0: i32) -> (i32, i32) {
    %c0_i32 = arith.constant 0 : i32
    %c0_i32_0 = arith.constant 0 : i32
    %c0_i32_1 = arith.constant 0 : i32
    return %c0_i32, %c0_i32_0 : i32, i32
  }
  func.func @transform_5(%arg0: i32) -> (i32, i32) {
    %c0_i32 = arith.constant 0 : i32
    %c0_i32_0 = arith.constant 0 : i32
    return %arg0, %c0_i32 : i32, i32
  }
}

</mosaic_0001>

<bundles_post_ra>
// kernel: tpu_custom_call.1
= control target key start
LH: loop header
LB: loop body
LE: loop exit
PB: predicated region body
PF: predicated region fallthrough
CT: control target
= control target key end

     0   :  { %10 = vsyncpa [#allocation3], 0  ;;  %s2022_s0 = inlined_call_operand.hbm [shape: f32[512,128], index: 0, kind: input, shape index: {}]   ;;  %s2023_s1 = inlined_call_operand.hbm [shape: bf16[128,256], index: 1, kind: input, shape index: {}]   ;;  %s2024_s2 = inlined_call_operand.hbm [shape: f32[1,256], index: 2, kind: input, shape index: {}]   ;;  %s2025_s3 = inlined_call_operand.hbm [shape: bf16[256,128], index: 3, kind: input, shape index: {}]   ;;  %s2026_s4 = inlined_call_operand.vmem [shape: f32[1,128], index: 4, kind: input, shape index: {}]   ;;  %s2027_s5 = inlined_call_operand.hbm [shape: f32[512,128], index: 5, kind: output, shape index: {}]  }
   0x1   :  { %12 = vsyncpa [#allocation3 + $0x1], 0 }
   0x2   :  { %13 = vsyncpa [#allocation6], 0 }
   0x3   :  { %14 = vsyncpa [#allocation9], 0 }
   0x4   :  { %15 = vsyncpa [#allocation4], 0 }
   0x5   :  { %17 = vsyncpa [#allocation4 + $0x1], 0  ;;  %s1680_s18 = smov 0   ;;  %s1682_s19 = smov 0  }
   0x6   :  { %s1684_s20 = smov 0   ;;  %s1686_s21 = smov 0  }
   0x7 LB: > { %s1701_s22 = sadd.s32 4294967295, %s1639_s21   ;;  %s1179_s23 = sadd.s32 4294967294, %s1639_s21   ;;  %s1639_s21 = sphi %s1686_s21, %s2040_s21   ;;  %s1635_s20 = sphi %s1684_s20, %s2039_s20   ;;  %s1631_s19 = sphi %s1682_s19, %s2038_s19   ;;  %s1627_s18 = sphi %s1680_s18, %s2037_s18  }
   0x8   : > { %p43_p0 = scmp.ne.s32.totalorder %s1631_s19, %s1627_s18  ;;  %p44_p1 = scmp.eq.s32.totalorder %s1701_s22, 0 }
   0x9   : > { %p151_p2 = scmp.eq.s32.totalorder %s1701_s22, 1  ;;  %p157_p3 = scmp.eq.s32.totalorder %s1179_s23, 1 }
   0xa   : > { %p1710_p4 = por %p44_p1, %p43_p0  ;;  %p1180_p5 = scmp.ge.s32.totalorder %s1639_s21, 1 }
   0xb   : > { %p1715_p6 = por %p157_p3, %p43_p0  ;;  %p164_p7 = scmp.lt.s32.totalorder %s1639_s21, 3 }
   0xc   : > { %s175_s28 = sshll.u32 %s2023_s1, 4  ;;  %s1641_s30 = smov [#allocation5]   ;;  %s176_s28 = int_to_ptr.hbm [resolvable:$true] %s175_s28 }
   0xd   : > { %p1723_p8 = pnand %p1180_p5, %p164_p7  ;;  %s177_s6 = sshll.u32 %s1641_s30, 4  ;;  %s178_s6 = int_to_ptr.vmem [resolvable:$true] %s177_s6 }
   0xe   : > { %s190_s10 = sshll.u32 %s2024_s2, 4  ;;  %s2028_s11 = smov 128   ;;  %s191_s10 = int_to_ptr.hbm [resolvable:$true] %s190_s10 }
   0xf   : > { %p1377_p9 = pneg %p1723_p8  ;;  %s1643_s12 = smov 8  }
  0x10   : > { %s1644_s13 = smov [#allocation7]   ;;  %s201_s17 = sshll.u32 %s2025_s3, 4  ;;  %s202_s17 = int_to_ptr.hbm [resolvable:$true] %s201_s17 }
  0x11   : > { %p1731_p10 = pnand %p1377_p9, %p44_p1  ;;  %s192_s14 = sshll.u32 %s1644_s13, 4  ;;  %s193_s14 = int_to_ptr.vmem [resolvable:$true] %s192_s14 }
  0x12   : > { %s1645_s23 = smov [#allocation8]   ;;  %s1646_s27 = smov 64  }
  0x13   : > { %1380 = dma.hbm_to_vmem [thread:$0]  (!%p1731_p10), %s176_s28, 2048, %s178_s6, [#allocation6], %s2028_s11, %s2028_s11, %s1643_s12  }
  0x14   : > { %1383 = dma.hbm_to_vmem [thread:$0]  (!%p1731_p10), %s191_s10, 32, %s193_s14, [#allocation6]  }
  0x15   : > { %s203_s26 = sshll.u32 %s1645_s23, 4  ;;  %s1647_s28 = smov 4   ;;  %s204_s26 = int_to_ptr.vmem [resolvable:$true] %s203_s26 }
  0x16   : > { %1386 = dma.hbm_to_vmem [thread:$0]  (!%p1731_p10), %s202_s17, 2048, %s204_s26, [#allocation9], %s1646_s27, %s1646_s27, %s1647_s28  }
  0x17   : > { %s1752_s30 = sadd.s32 1, %s1639_s21   ;;  %s30_s8 = sadd.s32 1, %s1635_s20 }
  0x18   : > { %s27_s6 = ssub.s32 %s1639_s21, %s1752_s30  ;;  %p37_p13 = scmp.ne.s32.totalorder %s1635_s20, %s1631_s19 }
  0x19   : > { %p28_p12 = scmp.eq.s32.totalorder %s27_s6, 0  ;;  %p38_p0 = scmp.eq.s32.totalorder %s1639_s21, 0 }
  0x1a   : > { %p1765_p3 = por %p151_p2, %p37_p13  ;;  %p1398_p5 = scmp.lt.s32.totalorder %s1639_s21, 2 }
  0x1b   : > { %s1761_s9 = scalar_select %p28_p12, %s1635_s20, %s30_s8  }
  0x1c   : > { %s220_s13 = sand.u32 1, %s1635_s20   ;;  %s1327_s14 = sshll.u32 %s1639_s21, 8 }
  0x1d   : > { %p39_p7 = por %p38_p0, %p37_p13  ;;  %s1185_s7 = sshll.u32 %s220_s13, 8 }
  0x1e   : > { %s229_s17 = scalar_lea.hbm %s2022_s0, %s1327_s14  ;;  %s224_s26 = scalar_lea.vmem [#allocation2], %s1185_s7 }
  0x1f   : > { %s230_s23 = sshll.u32 %s229_s17, 4  ;;  %s232_s27 = sshll.u32 %s224_s26, 4  ;;  %s231_s23 = int_to_ptr.hbm [resolvable:$true] %s230_s23  ;;  %s233_s27 = int_to_ptr.vmem [resolvable:$true] %s232_s27 }
  0x20   : > { %p1775_p9 = pnand %p1398_p5, %p39_p7  ;;  %s221_s6 = scalar_lea.sflag [#allocation3], %s220_s13 }
  0x21   : > { %s1535_s8 = sshra.s32 %s231_s23, 4  ;;  %s1542_s7 = scalar_lea.hbm %s2022_s0, 512  ;;  %s1536_s8 = int_to_ptr.hbm [resolvable:$true] %s1535_s8 }
  0x22   : > { %s1537_s11 = scalar_lea.hbm %s1536_s8, 256  ;;  %p1539_p10 = pneg %p1775_p9 }
  0x23   : > { %p1538_p2 = scmp.ne.s32.totalorder %s1536_s8, %s1537_s11  ;;  %p1543_p0 = scmp.lt.s32.totalorder %s1536_s8, %s2022_s0 }
  0x24   : > { %p1544_p5 = scmp.lt.s32.totalorder %s1542_s7, %s1537_s11 }
  0x25   : > { %p1540_p12 = pnand %p1539_p10, %p1538_p2 }
  0x26   : > { %p1545_p7 = por %p1544_p5, %p1543_p0 }
  0x27   : > { %p1541_p13 = pneg %p1540_p12 }
  0x29   : > { %p1546_p11 = pnand %p1545_p7, %p1541_p13 }
  0x2b   : > { %1549 = shalt.err (!%p1546_p11)
}
  0x2c   : > { %s2035_s13 = smov 128   ;;  %244 = sbr.rel (%p1723_p8) target bundleno = 616 (0x268), region = 40 }
  0x2d   : > { %1390 = dma.hbm_to_vmem [thread:$0]  (!%p1775_p9), %s231_s23, 4096, %s233_s27, %s221_s6, %s2035_s13, %s2035_s13, %s1643_s12  }
  0x2e   : > { %s1795_s26 = sand.u32 (!%p1723_p8), 1, %s1631_s19  }
  0x2f   : > { %s1189_s11 = sshll.u32 (!%p1723_p8), %s1795_s26, 8  ;;  %s247_s8 = scalar_lea.sflag (!%p1723_p8), [#allocation3], %s1795_s26 }
  0x30   : > { %s1801_s14 = scalar_lea.vmem (!%p1723_p8), [#allocation2], %s1189_s11 }
  0x31   : > { %1610 = dma.done.wait (%p1710_p4), %s247_s8, 4096  }
  0x32   : > { %1612 = vsyncadd (%p1710_p4), %s247_s8, 4294963200 }
  0x33   : > { %1614 = dma.done.wait (%p44_p1), [#allocation6], 2080  }
  0x34   : > { %1616 = vsyncadd (%p44_p1), [#allocation6], 4294965216 }
  0x35   : > { %1618 = dma.done.wait (%p44_p1), [#allocation9], 2048  }
  0x36   : > { %1620 = vsyncadd (%p44_p1), [#allocation9], 4294965248  ;;  %v1252_v0 = vld [vmem:[#allocation5 + $0x70] sm:$0xf]  ;;  %v1343_v1 = vld [vmem:[#allocation5 + $0x74] sm:$0xf0] }
  0x37   : > { %v1342_v2 = vld [vmem:[#allocation5 + $0x74] sm:$0xf]  ;;  %v1253_v3 = vor.u32 %v1343_v1, %v1252_v0  ;;  %v1254_v4 = vld [vmem:[#allocation5 + $0x78] sm:$0xf0]  ;;  %v1244_v5 = vld [vmem:[#allocation5 + $0x60] sm:$0xf] }
  0x38   : > { %v1341_v6 = vld [vmem:[#allocation5 + $0x64] sm:$0xf0]  ;;  %v1257_v7 = vor.u32 %v1342_v2, %v1254_v4  ;;  %v1340_v8 = vld [vmem:[#allocation5 + $0x64] sm:$0xf]  ;;  %v1246_v9 = vld [vmem:[#allocation5 + $0x68] sm:$0xf0] }
  0x39   : > { %445 = vmatpush.bf16.msra.mxu0 %v1253_v3  ;;  %v1245_v10 = vor.u32 %v1341_v6, %v1244_v5  ;;  %v1249_v11 = vor.u32 %v1340_v8, %v1246_v9  ;;  %v1236_v12 = vld [vmem:[#allocation5 + $0x50] sm:$0xf]  ;;  %v1339_v13 = vld [vmem:[#allocation5 + $0x54] sm:$0xf0]  ;;  %v1338_v14 = vld [vmem:[#allocation5 + $0x54] sm:$0xf] }
  0x3a   : > { %534 = vmatpush.bf16.msra.mxu1 %v1257_v7  ;;  %v1238_v15 = vld [vmem:[#allocation5 + $0x58] sm:$0xf0]  ;;  %v1237_v16 = vor.u32 %v1339_v13, %v1236_v12  ;;  %v1228_v18 = vld [vmem:[#allocation5 + $0x40] sm:$0xf]  ;;  %v1337_v19 = vld [vmem:[#allocation5 + $0x44] sm:$0xf0] }
  0x3b   : > { %v1241_v17 = vor.u32 %v1338_v14, %v1238_v15  ;;  %v1336_v20 = vld [vmem:[#allocation5 + $0x44] sm:$0xf]  ;;  %v1230_v21 = vld [vmem:[#allocation5 + $0x48] sm:$0xf0]  ;;  %v1229_v22 = vor.u32 %v1337_v19, %v1228_v18  ;;  %v1220_v24 = vld [vmem:[#allocation5 + $0x30] sm:$0xf] }
  0x3c   : > { %v1233_v23 = vor.u32 %v1336_v20, %v1230_v21  ;;  %v1335_v25 = vld [vmem:[#allocation5 + $0x34] sm:$0xf0]  ;;  %v1334_v26 = vld [vmem:[#allocation5 + $0x34] sm:$0xf]  ;;  %v1222_v27 = vld [vmem:[#allocation5 + $0x38] sm:$0xf0] }
  0x3d   : > { %446 = vmatpush.bf16.msra.mxu0 %v1245_v10  ;;  %v1221_v28 = vor.u32 %v1335_v25, %v1220_v24  ;;  %v1225_v29 = vor.u32 %v1334_v26, %v1222_v27  ;;  %v1212_v30 = vld [vmem:[#allocation5 + $0x20] sm:$0xf]  ;;  %v1333_v31 = vld [vmem:[#allocation5 + $0x24] sm:$0xf0]  ;;  %v1332_v32 = vld [vmem:[#allocation5 + $0x24] sm:$0xf] }
  0x3e   : > { %535 = vmatpush.bf16.msra.mxu1 %v1249_v11  ;;  %v1214_v33 = vld [vmem:[#allocation5 + $0x28] sm:$0xf0]  ;;  %v1213_v34 = vor.u32 %v1333_v31, %v1212_v30  ;;  %v1204_v36 = vld [vmem:[#allocation5 + $0x10] sm:$0xf]  ;;  %v1331_v37 = vld [vmem:[#allocation5 + $0x14] sm:$0xf0] }
  0x3f   : > { %v1217_v35 = vor.u32 %v1332_v32, %v1214_v33  ;;  %v1330_v38 = vld [vmem:[#allocation5 + $0x14] sm:$0xf]  ;;  %v1206_v39 = vld [vmem:[#allocation5 + $0x18] sm:$0xf0]  ;;  %v1205_v40 = vor.u32 %v1331_v37, %v1204_v36  ;;  %v1196_v42 = vld [vmem:[#allocation5] sm:$0xf] }
  0x40   : > { %v1209_v41 = vor.u32 %v1330_v38, %v1206_v39  ;;  %v1329_v43 = vld [vmem:[#allocation5 + $0x4] sm:$0xf0]  ;;  %v1328_v44 = vld [vmem:[#allocation5 + $0x4] sm:$0xf]  ;;  %v1198_v45 = vld [vmem:[#allocation5 + $0x8] sm:$0xf0] }
  0x41   : > { %447 = vmatpush.bf16.msra.mxu0 %v1237_v16  ;;  %v1197_v46 = vor.u32 %v1329_v43, %v1196_v42  ;;  %v295_v47 = vld [vmem:[%s1801_s14] sm:$0xff]  ;;  %v296_v48 = vld [vmem:[%s1801_s14 + $0x8] sm:$0xff]  ;;  %v1201_v49 = vor.u32 %v1328_v44, %v1198_v45  ;;  %v297_v51 = vld [vmem:[%s1801_s14 + $0x10] sm:$0xff]  ;;  %s1896_s12 = scalar_lea.vmem [#allocation10], %s1189_s11  ;;  %s1360_s23 = sshll.u32 %s1701_s22, 8 }
  0x42   : > { %536 = vmatpush.bf16.msra.mxu1 %v1241_v17  ;;  %v327_v50 = vpack.c.bf16 %v296_v48, %v295_v47  ;;  %v298_v52 = vld [vmem:[%s1801_s14 + $0x18] sm:$0xff]  ;;  %v299_v54 = vld [vmem:[%s1801_s14 + $0x20] sm:$0xff]  ;;  %v300_v55 = vld [vmem:[%s1801_s14 + $0x28] sm:$0xff]  ;;  %s1073_s6 = scalar_lea.hbm %s2027_s5, %s1360_s23  ;;  %s1074_s15 = sshll.u32 %s1896_s12, 4  ;;  %s1075_s15 = int_to_ptr.vmem [resolvable:$true] %s1074_s15 }
  0x43   : > { %v328_v53 = vpack.c.bf16 %v298_v52, %v297_v51  ;;  %v329_v56 = vpack.c.bf16 %v300_v55, %v299_v54  ;;  %v301_v57 = vld [vmem:[%s1801_s14 + $0x30] sm:$0xff]  ;;  %v302_v58 = vld [vmem:[%s1801_s14 + $0x38] sm:$0xff]  ;;  %v303_v60 = vld [vmem:[%s1801_s14 + $0x40] sm:$0xff]  ;;  %s1076_s7 = sshll.u32 %s1073_s6, 4  ;;  %s1062_s16 = scalar_lea.sflag [#allocation4], %s1795_s26  ;;  %s1077_s7 = int_to_ptr.hbm [resolvable:$true] %s1076_s7 }
  0x44   : > { %v330_v59 = vpack.c.bf16 %v302_v58, %v301_v57  ;;  %v304_v61 = vld [vmem:[%s1801_s14 + $0x48] sm:$0xff]  ;;  %v1351_v63 = vld [vmem:[#allocation8 + $0x38] sm:$0xff]  ;;  %v305_v1 = vld [vmem:[%s1801_s14 + $0x50] sm:$0xff]  ;;  %s1579_s17 = sshra.s32 %s1077_s7, 4  ;;  %s1585_s8 = scalar_lea.hbm %s2027_s5, 512  ;;  %s1580_s17 = int_to_ptr.hbm [resolvable:$true] %s1579_s17 }
  0x45   : > { %448 = vmatpush.bf16.msra.mxu0 %v1229_v22  ;;  %v331_v62 = vpack.c.bf16 %v304_v61, %v303_v60  ;;  %v1359_v0 = vld [vmem:[#allocation8 + $0x78] sm:$0xff]  ;;  %851 = vmatpush.bf16.msra.mxu2 %v1351_v63  ;;  %v1350_v4 = vld [vmem:[#allocation8 + $0x30] sm:$0xff]  ;;  %v1349_v6 = vld [vmem:[#allocation8 + $0x28] sm:$0xff]  ;;  %s1581_s22 = scalar_lea.hbm %s1580_s17, 256  ;;  %p1586_p11 = scmp.lt.s32.totalorder %s1580_s17, %s2027_s5 }
  0x46   : > { %537 = vmatpush.bf16.msra.mxu1 %v1233_v23  ;;  %940 = vmatpush.bf16.msra.mxu3 %v1359_v0  ;;  %v306_v2 = vld [vmem:[%s1801_s14 + $0x58] sm:$0xff]  ;;  %v1357_v7 = vld [vmem:[#allocation8 + $0x68] sm:$0xff]  ;;  %v1348_v8 = vld [vmem:[#allocation8 + $0x20] sm:$0xff]  ;;  %p1582_p1 = scmp.ne.s32.totalorder %s1580_s17, %s1581_s22  ;;  %p1587_p9 = scmp.lt.s32.totalorder %s1585_s8, %s1581_s22 }
  0x47   : > { %v332_v3 = vpack.c.bf16 %v306_v2, %v305_v1  ;;  %v1358_v5 = vld [vmem:[#allocation8 + $0x70] sm:$0xff]  ;;  %v1356_v9 = vld [vmem:[#allocation8 + $0x60] sm:$0xff]  ;;  %v1347_v13 = vld [vmem:[#allocation8 + $0x18] sm:$0xff] }
  0x48   : > { %v307_v10 = vld [vmem:[%s1801_s14 + $0x60] sm:$0xff]  ;;  %v308_v11 = vld [vmem:[%s1801_s14 + $0x68] sm:$0xff]  ;;  %v1346_v15 = vld [vmem:[#allocation8 + $0x10] sm:$0xff]  ;;  %p1583_p4 = pnand %p1582_p1, %p1765_p3  ;;  %p1588_p2 = por %p1587_p9, %p1586_p11 }
  0x49   : > { %449 = vmatpush.bf16.msra.mxu0 %v1221_v28  ;;  %852 = vmatpush.bf16.msra.mxu2 %v1350_v4  ;;  %v333_v12 = vpack.c.bf16 %v308_v11, %v307_v10  ;;  %v1355_v14 = vld [vmem:[#allocation8 + $0x58] sm:$0xff]  ;;  %v1354_v16 = vld [vmem:[#allocation8 + $0x50] sm:$0xff]  ;;  %v1345_v17 = vld [vmem:[#allocation8 + $0x8] sm:$0xff] }
  0x4a   : > { %538 = vmatpush.bf16.msra.mxu1 %v1225_v29  ;;  %941 = vmatpush.bf16.msra.mxu3 %v1358_v5  ;;  %v1353_v18 = vld [vmem:[#allocation8 + $0x48] sm:$0xff]  ;;  %v1344_v19 = vld [vmem:[#allocation8] sm:$0xff]  ;;  %v310_v22 = vld [vmem:[%s1801_s14 + $0x78] sm:$0xff]  ;;  %p1584_p8 = pneg %p1583_p4 }
  0x4b   : > { %v1352_v20 = vld [vmem:[#allocation8 + $0x40] sm:$0xff]  ;;  %v309_v21 = vld [vmem:[%s1801_s14 + $0x70] sm:$0xff]  ;;  %v359_v27 = vld [vmem:[#allocation7] sm:$0x3] }
  0x4c   : > { %v334_v23 = vpack.c.bf16 %v310_v22, %v309_v21  ;;  %v311_v24 = vld [vmem:[%s1801_s14 + $0x80] sm:$0xff]  ;;  %v312_v25 = vld [vmem:[%s1801_s14 + $0x88] sm:$0xff]  ;;  %v1833_v30 = vperm.slane %v359_v27, 0  ;;  %v1835_v31 = vperm.slane %v359_v27, 1  ;;  %v313_v42 = vld [vmem:[%s1801_s14 + $0x90] sm:$0xff]  ;;  %p1589_p10 = pnand %p1588_p2, %p1584_p8 }
  0x4d   : > { %450 = vmatpush.bf16.msra.mxu0 %v1213_v34  ;;  %853 = vmatpush.bf16.msra.mxu2 %v1349_v6  ;;  %v335_v26 = vpack.c.bf16 %v312_v25, %v311_v24  ;;  %v314_v43 = vld [vmem:[%s1801_s14 + $0x98] sm:$0xff]  ;;  %v316_v60 = vld [vmem:[%s1801_s14 + $0xa8] sm:$0xff] }
  0x4e   : > { %539 = vmatpush.bf16.msra.mxu1 %v1217_v35  ;;  %942 = vmatpush.bf16.msra.mxu3 %v1357_v7 }
  0x51   : > { %451 = vmatpush.bf16.msra.mxu0 %v1205_v40  ;;  %854 = vmatpush.bf16.msra.mxu2 %v1348_v8 }
  0x52   : > { %540 = vmatpush.bf16.msra.mxu1 %v1209_v41  ;;  %943 = vmatpush.bf16.msra.mxu3 %v1356_v9 }
  0x55   : > { %452 = vmatpush.bf16.msra.mxu0 %v1197_v46  ;;  %855 = vmatpush.bf16.msra.mxu2 %v1347_v13  ;;  %v336_v46 = vpack.c.bf16 %v314_v43, %v313_v42  ;;  %v318_v13 = vld [vmem:[%s1801_s14 + $0xb8] sm:$0xff] }
  0x56   : > { %541 = vmatpush.bf16.msra.mxu1 %v1201_v49  ;;  %944 = vmatpush.bf16.msra.mxu3 %v1355_v14 }
  0x58   : > { %453 = vmatmul.bf16.vlgmr.msra.gmra.mxu0 %v327_v50 }
  0x59   : > { %542 = vmatmul.bf16.vlgmr.msra.gmra.mxu1 %v327_v50  ;;  %856 = vmatpush.bf16.msra.mxu2 %v1346_v15 }
  0x5a   : > { %945 = vmatpush.bf16.msra.mxu3 %v1354_v16 }
  0x5d   : > { %857 = vmatpush.bf16.msra.mxu2 %v1345_v17 }
  0x5e   : > { %946 = vmatpush.bf16.msra.mxu3 %v1353_v18 }
  0x61   : > { %858 = vmatpush.bf16.msra.mxu2 %v1344_v19 }
  0x62   : > { %947 = vmatpush.bf16.msra.mxu3 %v1352_v20 }
  0x68   : > { %458 = vmatmul.bf16.gmra.mxu0 %v328_v53 }
  0x69   : > { %547 = vmatmul.bf16.gmra.mxu1 %v328_v53 }
  0x78   : > { %463 = vmatmul.bf16.gmra.mxu0 %v329_v56 }
  0x79   : > { %552 = vmatmul.bf16.gmra.mxu1 %v329_v56 }
  0x88   : > { %468 = vmatmul.bf16.gmra.mxu0 %v330_v59 }
  0x89   : > { %557 = vmatmul.bf16.gmra.mxu1 %v330_v59  ;;  %v315_v59 = vld [vmem:[%s1801_s14 + $0xa0] sm:$0xff] }
  0x8a   : > { %v337_v63 = vpack.c.bf16 %v316_v60, %v315_v59 }
  0x98   : > { %473 = vmatmul.bf16.gmra.mxu0 %v331_v62 }
  0x99   : > { %562 = vmatmul.bf16.gmra.mxu1 %v331_v62 }
  0xa8   : > { %478 = vmatmul.bf16.gmra.mxu0 %v332_v3 }
  0xa9   : > { %567 = vmatmul.bf16.gmra.mxu1 %v332_v3 }
  0xb8   : > { %483 = vmatmul.bf16.gmra.mxu0 %v333_v12 }
  0xb9   : > { %572 = vmatmul.bf16.gmra.mxu1 %v333_v12  ;;  %v317_v12 = vld [vmem:[%s1801_s14 + $0xb0] sm:$0xff] }
  0xba   : > { %v338_v16 = vpack.c.bf16 %v318_v13, %v317_v12 }
  0xc8   : > { %488 = vmatmul.bf16.gmra.mxu0 %v334_v23 }
  0xc9   : > { %577 = vmatmul.bf16.gmra.mxu1 %v334_v23 }
  0xd5   : > { %v454_v28 = vpop.f32.mrf.mxu0 }
  0xd6   : > { %v543_v29 = vpop.f32.mrf.mxu1  ;;  %v455_v32 = vadd.f32 %v454_v28, %v1833_v30 }
  0xd7   : > { %v544_v33 = vadd.f32 %v543_v29, %v1835_v31  ;;  %v319_v29 = vld [vmem:[%s1801_s14 + $0xc0] sm:$0xff] }
  0xd8   : > { %493 = vmatmul.bf16.gmra.mxu0 %v335_v26  ;;  %v623_v38 = vmax.f32 %v455_v32, 0.0  ;;  %v320_v32 = vld [vmem:[%s1801_s14 + $0xc8] sm:$0xff] }
  0xd9   : > { %582 = vmatmul.bf16.gmra.mxu1 %v335_v26  ;;  %v624_v40 = vmax.f32 %v544_v33, 0.0 }
  0xdd   : > { %v456_v34 = vpop.f32.mrf.mxu0 }
  0xde   : > { %v457_v35 = vadd.f32 %v456_v34, %v1833_v30  ;;  %v545_v36 = vpop.f32.mrf.mxu1 }
  0xdf   : > { %v546_v37 = vadd.f32 %v545_v36, %v1835_v31 }
  0xe0   : > { %v625_v39 = vmax.f32 %v457_v35, 0.0  ;;  %v339_v35 = vpack.c.bf16 %v320_v32, %v319_v29 }
  0xe1   : > { %v626_v41 = vmax.f32 %v546_v37, 0.0 }
  0xe2   : > { %v687_v44 = vpack.c.bf16 %v625_v39, %v623_v38 }
  0xe3   : > { %v688_v45 = vpack.c.bf16 %v626_v41, %v624_v40 }
  0xe4   : > { %859 = vmatmul.bf16.vlgmr.msra.gmra.mxu2 %v687_v44 }
  0xe5   : > { %948 = vmatmul.bf16.vlgmr.msra.gmra.mxu3 %v688_v45  ;;  %v459_v47 = vpop.f32.mrf.mxu0 }
  0xe6   : > { %v548_v48 = vpop.f32.mrf.mxu1  ;;  %v460_v49 = vadd.f32 %v459_v47, %v1833_v30 }
  0xe7   : > { %v549_v50 = vadd.f32 %v548_v48, %v1835_v31  ;;  %v321_v48 = vld [vmem:[%s1801_s14 + $0xd0] sm:$0xff] }
  0xe8   : > { %498 = vmatmul.bf16.gmra.mxu0 %v336_v46  ;;  %v627_v55 = vmax.f32 %v460_v49, 0.0  ;;  %v322_v49 = vld [vmem:[%s1801_s14 + $0xd8] sm:$0xff] }
  0xe9   : > { %587 = vmatmul.bf16.gmra.mxu1 %v336_v46  ;;  %v628_v57 = vmax.f32 %v549_v50, 0.0 }
  0xed   : > { %v461_v51 = vpop.f32.mrf.mxu0 }
  0xee   : > { %v462_v52 = vadd.f32 %v461_v51, %v1833_v30  ;;  %v550_v53 = vpop.f32.mrf.mxu1 }
  0xef   : > { %v551_v54 = vadd.f32 %v550_v53, %v1835_v31 }
  0xf0   : > { %v629_v56 = vmax.f32 %v462_v52, 0.0  ;;  %v340_v52 = vpack.c.bf16 %v322_v49, %v321_v48 }
  0xf1   : > { %v630_v58 = vmax.f32 %v551_v54, 0.0 }
  0xf2   : > { %v689_v61 = vpack.c.bf16 %v629_v56, %v627_v55 }
  0xf3   : > { %v690_v62 = vpack.c.bf16 %v630_v58, %v628_v57 }
  0xf4   : > { %864 = vmatmul.bf16.gmra.mxu2 %v689_v61 }
  0xf5   : > { %953 = vmatmul.bf16.gmra.mxu3 %v690_v62  ;;  %v464_v0 = vpop.f32.mrf.mxu0 }
  0xf6   : > { %v553_v1 = vpop.f32.mrf.mxu1  ;;  %v465_v2 = vadd.f32 %v464_v0, %v1833_v30 }
  0xf7   : > { %v554_v3 = vadd.f32 %v553_v1, %v1835_v31  ;;  %v323_v1 = vld [vmem:[%s1801_s14 + $0xe0] sm:$0xff] }
  0xf8   : > { %503 = vmatmul.bf16.gmra.mxu0 %v337_v63  ;;  %v631_v8 = vmax.f32 %v465_v2, 0.0  ;;  %v324_v2 = vld [vmem:[%s1801_s14 + $0xe8] sm:$0xff] }
  0xf9   : > { %592 = vmatmul.bf16.gmra.mxu1 %v337_v63  ;;  %v632_v10 = vmax.f32 %v554_v3, 0.0 }
  0xfd   : > { %v466_v4 = vpop.f32.mrf.mxu0 }
  0xfe   : > { %v467_v5 = vadd.f32 %v466_v4, %v1833_v30  ;;  %v555_v6 = vpop.f32.mrf.mxu1 }
  0xff   : > { %v556_v7 = vadd.f32 %v555_v6, %v1835_v31 }
 0x100   : > { %v633_v9 = vmax.f32 %v467_v5, 0.0  ;;  %v341_v5 = vpack.c.bf16 %v324_v2, %v323_v1 }
 0x101   : > { %v634_v11 = vmax.f32 %v556_v7, 0.0 }
 0x102   : > { %v691_v14 = vpack.c.bf16 %v633_v9, %v631_v8 }
 0x103   : > { %v692_v15 = vpack.c.bf16 %v634_v11, %v632_v10 }
 0x104   : > { %869 = vmatmul.bf16.gmra.mxu2 %v691_v14 }
 0x105   : > { %958 = vmatmul.bf16.gmra.mxu3 %v692_v15  ;;  %v469_v17 = vpop.f32.mrf.mxu0 }
 0x106   : > { %v558_v18 = vpop.f32.mrf.mxu1  ;;  %v470_v19 = vadd.f32 %v469_v17, %v1833_v30 }
 0x107   : > { %v559_v20 = vadd.f32 %v558_v18, %v1835_v31  ;;  %v325_v18 = vld [vmem:[%s1801_s14 + $0xf0] sm:$0xff] }
 0x108   : > { %508 = vmatmul.bf16.gmra.mxu0 %v338_v16  ;;  %v635_v25 = vmax.f32 %v470_v19, 0.0  ;;  %v326_v19 = vld [vmem:[%s1801_s14 + $0xf8] sm:$0xff] }
 0x109   : > { %597 = vmatmul.bf16.gmra.mxu1 %v338_v16  ;;  %v636_v27 = vmax.f32 %v559_v20, 0.0 }
 0x10d   : > { %v471_v21 = vpop.f32.mrf.mxu0 }
 0x10e   : > { %v472_v22 = vadd.f32 %v471_v21, %v1833_v30  ;;  %v560_v23 = vpop.f32.mrf.mxu1 }
 0x10f   : > { %v561_v24 = vadd.f32 %v560_v23, %v1835_v31 }
 0x110   : > { %v637_v26 = vmax.f32 %v472_v22, 0.0  ;;  %v342_v22 = vpack.c.bf16 %v326_v19, %v325_v18 }
 0x111   : > { %v638_v28 = vmax.f32 %v561_v24, 0.0 }
 0x112   : > { %v693_v33 = vpack.c.bf16 %v637_v26, %v635_v25 }
 0x113   : > { %v694_v34 = vpack.c.bf16 %v638_v28, %v636_v27 }
 0x114   : > { %874 = vmatmul.bf16.gmra.mxu2 %v693_v33 }
 0x115   : > { %963 = vmatmul.bf16.gmra.mxu3 %v694_v34  ;;  %v474_v36 = vpop.f32.mrf.mxu0 }
 0x116   : > { %v563_v37 = vpop.f32.mrf.mxu1  ;;  %v475_v38 = vadd.f32 %v474_v36, %v1833_v30 }
 0x117   : > { %v564_v39 = vadd.f32 %v563_v37, %v1835_v31 }
 0x118   : > { %513 = vmatmul.bf16.gmra.mxu0 %v339_v35  ;;  %v639_v44 = vmax.f32 %v475_v38, 0.0 }
 0x119   : > { %602 = vmatmul.bf16.gmra.mxu1 %v339_v35  ;;  %v640_v46 = vmax.f32 %v564_v39, 0.0 }
 0x11d   : > { %v476_v40 = vpop.f32.mrf.mxu0 }
 0x11e   : > { %v477_v41 = vadd.f32 %v476_v40, %v1833_v30  ;;  %v565_v42 = vpop.f32.mrf.mxu1 }
 0x11f   : > { %v566_v43 = vadd.f32 %v565_v42, %v1835_v31 }
 0x120   : > { %v641_v45 = vmax.f32 %v477_v41, 0.0 }
 0x121   : > { %v642_v47 = vmax.f32 %v566_v43, 0.0 }
 0x122   : > { %v695_v50 = vpack.c.bf16 %v641_v45, %v639_v44 }
 0x123   : > { %v696_v51 = vpack.c.bf16 %v642_v47, %v640_v46 }
 0x124   : > { %879 = vmatmul.bf16.gmra.mxu2 %v695_v50 }
 0x125   : > { %968 = vmatmul.bf16.gmra.mxu3 %v696_v51  ;;  %v479_v53 = vpop.f32.mrf.mxu0 }
 0x126   : > { %v568_v54 = vpop.f32.mrf.mxu1  ;;  %v480_v55 = vadd.f32 %v479_v53, %v1833_v30  ;;  %v1890_v53 = vld [vmem:[%s2026_s4] ss:$0 sm:$0xff] }
 0x127   : > { %v569_v56 = vadd.f32 %v568_v54, %v1835_v31 }
 0x128   : > { %518 = vmatmul.bf16.gmra.mxu0 %v340_v52  ;;  %v643_v61 = vmax.f32 %v480_v55, 0.0 }
 0x129   : > { %607 = vmatmul.bf16.gmra.mxu1 %v340_v52  ;;  %v644_v63 = vmax.f32 %v569_v56, 0.0 }
 0x12d   : > { %v481_v57 = vpop.f32.mrf.mxu0 }
 0x12e   : > { %v482_v58 = vadd.f32 %v481_v57, %v1833_v30  ;;  %v570_v59 = vpop.f32.mrf.mxu1 }
 0x12f   : > { %v571_v60 = vadd.f32 %v570_v59, %v1835_v31 }
 0x130   : > { %v645_v62 = vmax.f32 %v482_v58, 0.0 }
 0x131   : > { %v646_v0 = vmax.f32 %v571_v60, 0.0 }
 0x132   : > { %v697_v3 = vpack.c.bf16 %v645_v62, %v643_v61 }
 0x133   : > { %v698_v4 = vpack.c.bf16 %v646_v0, %v644_v63 }
 0x134   : > { %884 = vmatmul.bf16.gmra.mxu2 %v697_v3 }
 0x135   : > { %973 = vmatmul.bf16.gmra.mxu3 %v698_v4  ;;  %v484_v6 = vpop.f32.mrf.mxu0 }
 0x136   : > { %v573_v7 = vpop.f32.mrf.mxu1  ;;  %v485_v8 = vadd.f32 %v484_v6, %v1833_v30 }
 0x137   : > { %v574_v9 = vadd.f32 %v573_v7, %v1835_v31 }
 0x138   : > { %523 = vmatmul.bf16.gmra.mxu0 %v341_v5  ;;  %v647_v14 = vmax.f32 %v485_v8, 0.0 }
 0x139   : > { %612 = vmatmul.bf16.gmra.mxu1 %v341_v5  ;;  %v648_v16 = vmax.f32 %v574_v9, 0.0 }
 0x13d   : > { %v486_v10 = vpop.f32.mrf.mxu0 }
 0x13e   : > { %v487_v11 = vadd.f32 %v486_v10, %v1833_v30  ;;  %v575_v12 = vpop.f32.mrf.mxu1 }
 0x13f   : > { %v576_v13 = vadd.f32 %v575_v12, %v1835_v31 }
 0x140   : > { %v649_v15 = vmax.f32 %v487_v11, 0.0 }
 0x141   : > { %v650_v17 = vmax.f32 %v576_v13, 0.0 }
 0x142   : > { %v699_v20 = vpack.c.bf16 %v649_v15, %v647_v14 }
 0x143   : > { %v700_v21 = vpack.c.bf16 %v650_v17, %v648_v16 }
 0x144   : > { %889 = vmatmul.bf16.gmra.mxu2 %v699_v20 }
 0x145   : > { %978 = vmatmul.bf16.gmra.mxu3 %v700_v21  ;;  %v489_v23 = vpop.f32.mrf.mxu0 }
 0x146   : > { %v578_v24 = vpop.f32.mrf.mxu1  ;;  %v490_v25 = vadd.f32 %v489_v23, %v1833_v30 }
 0x147   : > { %v579_v26 = vadd.f32 %v578_v24, %v1835_v31 }
 0x148   : > { %528 = vmatmul.bf16.gmra.mxu0 %v342_v22  ;;  %v651_v33 = vmax.f32 %v490_v25, 0.0 }
 0x149   : > { %617 = vmatmul.bf16.gmra.mxu1 %v342_v22  ;;  %v652_v35 = vmax.f32 %v579_v26, 0.0 }
 0x14d   : > { %v491_v27 = vpop.f32.mrf.mxu0 }
 0x14e   : > { %v492_v28 = vadd.f32 %v491_v27, %v1833_v30  ;;  %v580_v29 = vpop.f32.mrf.mxu1 }
 0x14f   : > { %v581_v32 = vadd.f32 %v580_v29, %v1835_v31 }
 0x150   : > { %v653_v34 = vmax.f32 %v492_v28, 0.0 }
 0x151   : > { %v654_v36 = vmax.f32 %v581_v32, 0.0 }
 0x152   : > { %v701_v37 = vpack.c.bf16 %v653_v34, %v651_v33 }
 0x153   : > { %v702_v38 = vpack.c.bf16 %v654_v36, %v652_v35 }
 0x154   : > { %894 = vmatmul.bf16.gmra.mxu2 %v701_v37 }
 0x155   : > { %983 = vmatmul.bf16.gmra.mxu3 %v702_v38  ;;  %v494_v39 = vpop.f32.mrf.mxu0 }
 0x156   : > { %v583_v40 = vpop.f32.mrf.mxu1  ;;  %v495_v41 = vadd.f32 %v494_v39, %v1833_v30 }
 0x157   : > { %v584_v42 = vadd.f32 %v583_v40, %v1835_v31 }
 0x158   : > { %v655_v47 = vmax.f32 %v495_v41, 0.0 }
 0x159   : > { %v656_v49 = vmax.f32 %v584_v42, 0.0 }
 0x15d   : > { %v496_v43 = vpop.f32.mrf.mxu0 }
 0x15e   : > { %v497_v44 = vadd.f32 %v496_v43, %v1833_v30  ;;  %v585_v45 = vpop.f32.mrf.mxu1 }
 0x15f   : > { %v586_v46 = vadd.f32 %v585_v45, %v1835_v31 }
 0x160   : > { %v657_v48 = vmax.f32 %v497_v44, 0.0 }
 0x161   : > { %v658_v50 = vmax.f32 %v586_v46, 0.0 }
 0x162   : > { %v703_v51 = vpack.c.bf16 %v657_v48, %v655_v47 }
 0x163   : > { %v704_v52 = vpack.c.bf16 %v658_v50, %v656_v49 }
 0x164   : > { %899 = vmatmul.bf16.gmra.mxu2 %v703_v51 }
 0x165   : > { %988 = vmatmul.bf16.gmra.mxu3 %v704_v52  ;;  %v499_v54 = vpop.f32.mrf.mxu0 }
 0x166   : > { %v588_v55 = vpop.f32.mrf.mxu1  ;;  %v500_v60 = vadd.f32 %v499_v54, %v1833_v30 }
 0x167   : > { %v860_v56 = vpop.f32.mrf.mxu2  ;;  %v589_v61 = vadd.f32 %v588_v55, %v1835_v31 }
 0x168   : > { %v861_v57 = vadd.f32 %v1890_v53, %v860_v56  ;;  %v949_v58 = vpop.f32.mrf.mxu3  ;;  %v659_v3 = vmax.f32 %v500_v60, 0.0 }
 0x169   : > { %v660_v7 = vmax.f32 %v589_v61, 0.0 }
 0x16a   : > { %v950_v59 = vadd.f32 %v949_v58, %v861_v57 }
 0x16c   : > { %1029 = vst [vmem:[%s1896_s12] sm:$0xff] %v950_v59 }
 0x16d   : > { %v501_v62 = vpop.f32.mrf.mxu0 }
 0x16e   : > { %v502_v63 = vadd.f32 %v501_v62, %v1833_v30  ;;  %v590_v0 = vpop.f32.mrf.mxu1 }
 0x16f   : > { %v591_v1 = vadd.f32 %v590_v0, %v1835_v31  ;;  %v862_v2 = vpop.f32.mrf.mxu2 }
 0x170   : > { %v661_v4 = vmax.f32 %v502_v63, 0.0  ;;  %v863_v5 = vadd.f32 %v1890_v53, %v862_v2  ;;  %v951_v6 = vpop.f32.mrf.mxu3 }
 0x171   : > { %v662_v8 = vmax.f32 %v591_v1, 0.0 }
 0x172   : > { %v952_v9 = vadd.f32 %v951_v6, %v863_v5  ;;  %v705_v10 = vpack.c.bf16 %v661_v4, %v659_v3 }
 0x173   : > { %v706_v11 = vpack.c.bf16 %v662_v8, %v660_v7 }
 0x174   : > { %1030 = vst [vmem:[%s1896_s12 + $0x8] sm:$0xff] %v952_v9  ;;  %904 = vmatmul.bf16.gmra.mxu2 %v705_v10 }
 0x175   : > { %993 = vmatmul.bf16.gmra.mxu3 %v706_v11  ;;  %v504_v12 = vpop.f32.mrf.mxu0 }
 0x176   : > { %v593_v13 = vpop.f32.mrf.mxu1  ;;  %v505_v18 = vadd.f32 %v504_v12, %v1833_v30 }
 0x177   : > { %v865_v14 = vpop.f32.mrf.mxu2  ;;  %v594_v19 = vadd.f32 %v593_v13, %v1835_v31 }
 0x178   : > { %v866_v15 = vadd.f32 %v1890_v53, %v865_v14  ;;  %v954_v16 = vpop.f32.mrf.mxu3  ;;  %v663_v25 = vmax.f32 %v505_v18, 0.0 }
 0x179   : > { %v664_v29 = vmax.f32 %v594_v19, 0.0 }
 0x17a   : > { %v955_v17 = vadd.f32 %v954_v16, %v866_v15 }
 0x17c   : > { %1031 = vst [vmem:[%s1896_s12 + $0x10] sm:$0xff] %v955_v17 }
 0x17d   : > { %v506_v20 = vpop.f32.mrf.mxu0 }
 0x17e   : > { %v507_v21 = vadd.f32 %v506_v20, %v1833_v30  ;;  %v595_v22 = vpop.f32.mrf.mxu1 }
 0x17f   : > { %v596_v23 = vadd.f32 %v595_v22, %v1835_v31  ;;  %v867_v24 = vpop.f32.mrf.mxu2 }
 0x180   : > { %v665_v26 = vmax.f32 %v507_v21, 0.0  ;;  %v868_v27 = vadd.f32 %v1890_v53, %v867_v24  ;;  %v956_v28 = vpop.f32.mrf.mxu3 }
 0x181   : > { %v666_v32 = vmax.f32 %v596_v23, 0.0 }
 0x182   : > { %v957_v33 = vadd.f32 %v956_v28, %v868_v27  ;;  %v707_v34 = vpack.c.bf16 %v665_v26, %v663_v25 }
 0x183   : > { %v708_v35 = vpack.c.bf16 %v666_v32, %v664_v29 }
 0x184   : > { %1032 = vst [vmem:[%s1896_s12 + $0x18] sm:$0xff] %v957_v33  ;;  %909 = vmatmul.bf16.gmra.mxu2 %v707_v34 }
 0x185   : > { %998 = vmatmul.bf16.gmra.mxu3 %v708_v35  ;;  %v509_v36 = vpop.f32.mrf.mxu0 }
 0x186   : > { %v598_v37 = vpop.f32.mrf.mxu1  ;;  %v510_v42 = vadd.f32 %v509_v36, %v1833_v30 }
 0x187   : > { %v870_v38 = vpop.f32.mrf.mxu2  ;;  %v599_v43 = vadd.f32 %v598_v37, %v1835_v31 }
 0x188   : > { %v871_v39 = vadd.f32 %v1890_v53, %v870_v38  ;;  %v959_v40 = vpop.f32.mrf.mxu3  ;;  %v667_v49 = vmax.f32 %v510_v42, 0.0 }
 0x189   : > { %v668_v54 = vmax.f32 %v599_v43, 0.0 }
 0x18a   : > { %v960_v41 = vadd.f32 %v959_v40, %v871_v39 }
 0x18c   : > { %1033 = vst [vmem:[%s1896_s12 + $0x20] sm:$0xff] %v960_v41 }
 0x18d   : > { %v511_v44 = vpop.f32.mrf.mxu0 }
 0x18e   : > { %v512_v45 = vadd.f32 %v511_v44, %v1833_v30  ;;  %v600_v46 = vpop.f32.mrf.mxu1 }
 0x18f   : > { %v601_v47 = vadd.f32 %v600_v46, %v1835_v31  ;;  %v872_v48 = vpop.f32.mrf.mxu2 }
 0x190   : > { %v669_v50 = vmax.f32 %v512_v45, 0.0  ;;  %v873_v51 = vadd.f32 %v1890_v53, %v872_v48  ;;  %v961_v52 = vpop.f32.mrf.mxu3 }
 0x191   : > { %v670_v55 = vmax.f32 %v601_v47, 0.0 }
 0x192   : > { %v962_v56 = vadd.f32 %v961_v52, %v873_v51  ;;  %v709_v57 = vpack.c.bf16 %v669_v50, %v667_v49 }
 0x193   : > { %v710_v58 = vpack.c.bf16 %v670_v55, %v668_v54 }
 0x194   : > { %1034 = vst [vmem:[%s1896_s12 + $0x28] sm:$0xff] %v962_v56  ;;  %914 = vmatmul.bf16.gmra.mxu2 %v709_v57 }
 0x195   : > { %1003 = vmatmul.bf16.gmra.mxu3 %v710_v58  ;;  %v514_v59 = vpop.f32.mrf.mxu0 }
 0x196   : > { %v603_v60 = vpop.f32.mrf.mxu1  ;;  %v515_v1 = vadd.f32 %v514_v59, %v1833_v30 }
 0x197   : > { %v875_v61 = vpop.f32.mrf.mxu2  ;;  %v604_v2 = vadd.f32 %v603_v60, %v1835_v31 }
 0x198   : > { %v876_v62 = vadd.f32 %v1890_v53, %v875_v61  ;;  %v964_v63 = vpop.f32.mrf.mxu3  ;;  %v671_v8 = vmax.f32 %v515_v1, 0.0 }
 0x199   : > { %v672_v12 = vmax.f32 %v604_v2, 0.0 }
 0x19a   : > { %v965_v0 = vadd.f32 %v964_v63, %v876_v62 }
 0x19c   : > { %1035 = vst [vmem:[%s1896_s12 + $0x30] sm:$0xff] %v965_v0 }
 0x19d   : > { %v516_v3 = vpop.f32.mrf.mxu0 }
 0x19e   : > { %v517_v4 = vadd.f32 %v516_v3, %v1833_v30  ;;  %v605_v5 = vpop.f32.mrf.mxu1 }
 0x19f   : > { %v606_v6 = vadd.f32 %v605_v5, %v1835_v31  ;;  %v877_v7 = vpop.f32.mrf.mxu2 }
 0x1a0   : > { %v673_v9 = vmax.f32 %v517_v4, 0.0  ;;  %v878_v10 = vadd.f32 %v1890_v53, %v877_v7  ;;  %v966_v11 = vpop.f32.mrf.mxu3 }
 0x1a1   : > { %v674_v13 = vmax.f32 %v606_v6, 0.0 }
 0x1a2   : > { %v711_v14 = vpack.c.bf16 %v673_v9, %v671_v8  ;;  %v967_v15 = vadd.f32 %v966_v11, %v878_v10 }
 0x1a3   : > { %v712_v16 = vpack.c.bf16 %v674_v13, %v672_v12 }
 0x1a4   : > { %1036 = vst [vmem:[%s1896_s12 + $0x38] sm:$0xff] %v967_v15  ;;  %919 = vmatmul.bf16.gmra.mxu2 %v711_v14 }
 0x1a5   : > { %1008 = vmatmul.bf16.gmra.mxu3 %v712_v16  ;;  %v519_v17 = vpop.f32.mrf.mxu0 }
 0x1a6   : > { %v608_v18 = vpop.f32.mrf.mxu1  ;;  %v520_v23 = vadd.f32 %v519_v17, %v1833_v30 }
 0x1a7   : > { %v880_v19 = vpop.f32.mrf.mxu2  ;;  %v609_v24 = vadd.f32 %v608_v18, %v1835_v31 }
 0x1a8   : > { %v881_v20 = vadd.f32 %v1890_v53, %v880_v19  ;;  %v969_v21 = vpop.f32.mrf.mxu3  ;;  %v675_v32 = vmax.f32 %v520_v23, 0.0 }
 0x1a9   : > { %v676_v36 = vmax.f32 %v609_v24, 0.0 }
 0x1aa   : > { %v970_v22 = vadd.f32 %v969_v21, %v881_v20 }
 0x1ac   : > { %1037 = vst [vmem:[%s1896_s12 + $0x40] sm:$0xff] %v970_v22 }
 0x1ad   : > { %v521_v25 = vpop.f32.mrf.mxu0 }
 0x1ae   : > { %v522_v26 = vadd.f32 %v521_v25, %v1833_v30  ;;  %v610_v27 = vpop.f32.mrf.mxu1 }
 0x1af   : > { %v611_v28 = vadd.f32 %v610_v27, %v1835_v31  ;;  %v882_v29 = vpop.f32.mrf.mxu2 }
 0x1b0   : > { %v677_v33 = vmax.f32 %v522_v26, 0.0  ;;  %v883_v34 = vadd.f32 %v1890_v53, %v882_v29  ;;  %v971_v35 = vpop.f32.mrf.mxu3 }
 0x1b1   : > { %v678_v37 = vmax.f32 %v611_v28, 0.0 }
 0x1b2   : > { %v713_v38 = vpack.c.bf16 %v677_v33, %v675_v32  ;;  %v972_v39 = vadd.f32 %v971_v35, %v883_v34 }
 0x1b3   : > { %v714_v40 = vpack.c.bf16 %v678_v37, %v676_v36 }
 0x1b4   : > { %1038 = vst [vmem:[%s1896_s12 + $0x48] sm:$0xff] %v972_v39  ;;  %924 = vmatmul.bf16.gmra.mxu2 %v713_v38 }
 0x1b5   : > { %1013 = vmatmul.bf16.gmra.mxu3 %v714_v40  ;;  %v524_v41 = vpop.f32.mrf.mxu0 }
 0x1b6   : > { %v613_v42 = vpop.f32.mrf.mxu1  ;;  %v525_v47 = vadd.f32 %v524_v41, %v1833_v30 }
 0x1b7   : > { %v885_v43 = vpop.f32.mrf.mxu2  ;;  %v614_v48 = vadd.f32 %v613_v42, %v1835_v31 }
 0x1b8   : > { %v886_v44 = vadd.f32 %v1890_v53, %v885_v43  ;;  %v974_v45 = vpop.f32.mrf.mxu3  ;;  %v679_v55 = vmax.f32 %v525_v47, 0.0 }
 0x1b9   : > { %v680_v59 = vmax.f32 %v614_v48, 0.0 }
 0x1ba   : > { %v975_v46 = vadd.f32 %v974_v45, %v886_v44 }
 0x1bc   : > { %1039 = vst [vmem:[%s1896_s12 + $0x50] sm:$0xff] %v975_v46 }
 0x1bd   : > { %v526_v49 = vpop.f32.mrf.mxu0 }
 0x1be   : > { %v527_v50 = vadd.f32 %v526_v49, %v1833_v30  ;;  %v615_v51 = vpop.f32.mrf.mxu1 }
 0x1bf   : > { %v616_v52 = vadd.f32 %v615_v51, %v1835_v31  ;;  %v887_v54 = vpop.f32.mrf.mxu2 }
 0x1c0   : > { %v681_v56 = vmax.f32 %v527_v50, 0.0  ;;  %v888_v57 = vadd.f32 %v1890_v53, %v887_v54  ;;  %v976_v58 = vpop.f32.mrf.mxu3 }
 0x1c1   : > { %v682_v60 = vmax.f32 %v616_v52, 0.0 }
 0x1c2   : > { %v715_v61 = vpack.c.bf16 %v681_v56, %v679_v55  ;;  %v977_v62 = vadd.f32 %v976_v58, %v888_v57 }
 0x1c3   : > { %v716_v63 = vpack.c.bf16 %v682_v60, %v680_v59 }
 0x1c4   : > { %1040 = vst [vmem:[%s1896_s12 + $0x58] sm:$0xff] %v977_v62  ;;  %929 = vmatmul.bf16.gmra.mxu2 %v715_v61 }
 0x1c5   : > { %1018 = vmatmul.bf16.gmra.mxu3 %v716_v63  ;;  %v529_v0 = vpop.f32.mrf.mxu0 }
 0x1c6   : > { %v618_v1 = vpop.f32.mrf.mxu1  ;;  %v530_v6 = vadd.f32 %v529_v0, %v1833_v30 }
 0x1c7   : > { %v890_v2 = vpop.f32.mrf.mxu2  ;;  %v619_v7 = vadd.f32 %v618_v1, %v1835_v31 }
 0x1c8   : > { %v891_v3 = vadd.f32 %v1890_v53, %v890_v2  ;;  %v979_v4 = vpop.f32.mrf.mxu3  ;;  %v683_v13 = vmax.f32 %v530_v6, 0.0 }
 0x1c9   : > { %v684_v17 = vmax.f32 %v619_v7, 0.0 }
 0x1ca   : > { %v980_v5 = vadd.f32 %v979_v4, %v891_v3 }
 0x1cc   : > { %1041 = vst [vmem:[%s1896_s12 + $0x60] sm:$0xff] %v980_v5 }
 0x1cd   : > { %v531_v8 = vpop.f32.mrf.mxu0 }
 0x1ce   : > { %v532_v9 = vadd.f32 %v531_v8, %v1833_v30  ;;  %v620_v10 = vpop.f32.mrf.mxu1 }
 0x1cf   : > { %v621_v11 = vadd.f32 %v620_v10, %v1835_v31  ;;  %v892_v12 = vpop.f32.mrf.mxu2 }
 0x1d0   : > { %v685_v14 = vmax.f32 %v532_v9, 0.0  ;;  %v893_v15 = vadd.f32 %v1890_v53, %v892_v12  ;;  %v981_v16 = vpop.f32.mrf.mxu3 }
 0x1d1   : > { %v686_v18 = vmax.f32 %v621_v11, 0.0 }
 0x1d2   : > { %v717_v19 = vpack.c.bf16 %v685_v14, %v683_v13  ;;  %v982_v20 = vadd.f32 %v981_v16, %v893_v15 }
 0x1d3   : > { %v718_v21 = vpack.c.bf16 %v686_v18, %v684_v17 }
 0x1d4   : > { %1042 = vst [vmem:[%s1896_s12 + $0x68] sm:$0xff] %v982_v20  ;;  %934 = vmatmul.bf16.gmra.mxu2 %v717_v19 }
 0x1d5   : > { %1023 = vmatmul.bf16.gmra.mxu3 %v718_v21 }
 0x1d7   : > { %v895_v30 = vpop.f32.mrf.mxu2 }
 0x1d8   : > { %v896_v31 = vadd.f32 %v1890_v53, %v895_v30  ;;  %v984_v22 = vpop.f32.mrf.mxu3 }
 0x1da   : > { %v985_v23 = vadd.f32 %v984_v22, %v896_v31 }
 0x1dc   : > { %1043 = vst [vmem:[%s1896_s12 + $0x70] sm:$0xff] %v985_v23 }
 0x1df   : > { %v897_v24 = vpop.f32.mrf.mxu2 }
 0x1e0   : > { %v898_v25 = vadd.f32 %v1890_v53, %v897_v24  ;;  %v986_v26 = vpop.f32.mrf.mxu3 }
 0x1e2   : > { %v987_v27 = vadd.f32 %v986_v26, %v898_v25 }
 0x1e4   : > { %1044 = vst [vmem:[%s1896_s12 + $0x78] sm:$0xff] %v987_v27 }
 0x1e7   : > { %v900_v28 = vpop.f32.mrf.mxu2 }
 0x1e8   : > { %v901_v29 = vadd.f32 %v1890_v53, %v900_v28  ;;  %v989_v32 = vpop.f32.mrf.mxu3 }
 0x1ea   : > { %v990_v33 = vadd.f32 %v989_v32, %v901_v29 }
 0x1ec   : > { %1045 = vst [vmem:[%s1896_s12 + $0x80] sm:$0xff] %v990_v33 }
 0x1ef   : > { %v902_v34 = vpop.f32.mrf.mxu2 }
 0x1f0   : > { %v903_v35 = vadd.f32 %v1890_v53, %v902_v34  ;;  %v991_v36 = vpop.f32.mrf.mxu3 }
 0x1f2   : > { %v992_v37 = vadd.f32 %v991_v36, %v903_v35 }
 0x1f4   : > { %1046 = vst [vmem:[%s1896_s12 + $0x88] sm:$0xff] %v992_v37 }
 0x1f7   : > { %v905_v38 = vpop.f32.mrf.mxu2 }
 0x1f8   : > { %v906_v39 = vadd.f32 %v1890_v53, %v905_v38  ;;  %v994_v40 = vpop.f32.mrf.mxu3 }
 0x1fa   : > { %v995_v41 = vadd.f32 %v994_v40, %v906_v39 }
 0x1fc   : > { %1047 = vst [vmem:[%s1896_s12 + $0x90] sm:$0xff] %v995_v41 }
 0x1ff   : > { %v907_v42 = vpop.f32.mrf.mxu2 }
 0x200   : > { %v908_v43 = vadd.f32 %v1890_v53, %v907_v42  ;;  %v996_v44 = vpop.f32.mrf.mxu3 }
 0x202   : > { %v997_v45 = vadd.f32 %v996_v44, %v908_v43 }
 0x204   : > { %1048 = vst [vmem:[%s1896_s12 + $0x98] sm:$0xff] %v997_v45 }
 0x207   : > { %v910_v46 = vpop.f32.mrf.mxu2 }
 0x208   : > { %v911_v47 = vadd.f32 %v1890_v53, %v910_v46  ;;  %v999_v48 = vpop.f32.mrf.mxu3 }
 0x20a   : > { %v1000_v49 = vadd.f32 %v999_v48, %v911_v47 }
 0x20c   : > { %1049 = vst [vmem:[%s1896_s12 + $0xa0] sm:$0xff] %v1000_v49 }
 0x20f   : > { %v912_v50 = vpop.f32.mrf.mxu2 }
 0x210   : > { %v913_v51 = vadd.f32 %v1890_v53, %v912_v50  ;;  %v1001_v52 = vpop.f32.mrf.mxu3 }
 0x212   : > { %v1002_v54 = vadd.f32 %v1001_v52, %v913_v51 }
 0x214   : > { %1050 = vst [vmem:[%s1896_s12 + $0xa8] sm:$0xff] %v1002_v54 }
 0x217   : > { %v915_v55 = vpop.f32.mrf.mxu2 }
 0x218   : > { %v916_v56 = vadd.f32 %v1890_v53, %v915_v55  ;;  %v1004_v57 = vpop.f32.mrf.mxu3 }
 0x21a   : > { %v1005_v58 = vadd.f32 %v1004_v57, %v916_v56 }
 0x21c   : > { %1051 = vst [vmem:[%s1896_s12 + $0xb0] sm:$0xff] %v1005_v58 }
 0x21f   : > { %v917_v59 = vpop.f32.mrf.mxu2 }
 0x220   : > { %v918_v60 = vadd.f32 %v1890_v53, %v917_v59  ;;  %v1006_v61 = vpop.f32.mrf.mxu3 }
 0x222   : > { %v1007_v62 = vadd.f32 %v1006_v61, %v918_v60 }
 0x224   : > { %1052 = vst [vmem:[%s1896_s12 + $0xb8] sm:$0xff] %v1007_v62 }
 0x227   : > { %v920_v63 = vpop.f32.mrf.mxu2 }
 0x228   : > { %v921_v0 = vadd.f32 %v1890_v53, %v920_v63  ;;  %v1009_v1 = vpop.f32.mrf.mxu3 }
 0x22a   : > { %v1010_v2 = vadd.f32 %v1009_v1, %v921_v0 }
 0x22c   : > { %1053 = vst [vmem:[%s1896_s12 + $0xc0] sm:$0xff] %v1010_v2 }
 0x22f   : > { %v922_v3 = vpop.f32.mrf.mxu2 }
 0x230   : > { %v923_v4 = vadd.f32 %v1890_v53, %v922_v3  ;;  %v1011_v5 = vpop.f32.mrf.mxu3 }
 0x232   : > { %v1012_v6 = vadd.f32 %v1011_v5, %v923_v4 }
 0x234   : > { %1054 = vst [vmem:[%s1896_s12 + $0xc8] sm:$0xff] %v1012_v6 }
 0x237   : > { %v925_v7 = vpop.f32.mrf.mxu2 }
 0x238   : > { %v926_v8 = vadd.f32 %v1890_v53, %v925_v7  ;;  %v1014_v9 = vpop.f32.mrf.mxu3 }
 0x23a   : > { %v1015_v10 = vadd.f32 %v1014_v9, %v926_v8 }
 0x23c   : > { %1055 = vst [vmem:[%s1896_s12 + $0xd0] sm:$0xff] %v1015_v10 }
 0x23f   : > { %v927_v11 = vpop.f32.mrf.mxu2 }
 0x240   : > { %v928_v12 = vadd.f32 %v1890_v53, %v927_v11  ;;  %v1016_v13 = vpop.f32.mrf.mxu3 }
 0x242   : > { %v1017_v14 = vadd.f32 %v1016_v13, %v928_v12 }
 0x244   : > { %1056 = vst [vmem:[%s1896_s12 + $0xd8] sm:$0xff] %v1017_v14 }
 0x247   : > { %v930_v15 = vpop.f32.mrf.mxu2 }
 0x248   : > { %v931_v16 = vadd.f32 %v1890_v53, %v930_v15  ;;  %v1019_v17 = vpop.f32.mrf.mxu3 }
 0x24a   : > { %v1020_v18 = vadd.f32 %v1019_v17, %v931_v16 }
 0x24c   : > { %1057 = vst [vmem:[%s1896_s12 + $0xe0] sm:$0xff] %v1020_v18 }
 0x24f   : > { %v932_v19 = vpop.f32.mrf.mxu2 }
 0x250   : > { %v933_v20 = vadd.f32 %v1890_v53, %v932_v19  ;;  %v1021_v21 = vpop.f32.mrf.mxu3 }
 0x252   : > { %v1022_v30 = vadd.f32 %v1021_v21, %v933_v20 }
 0x254   : > { %1058 = vst [vmem:[%s1896_s12 + $0xe8] sm:$0xff] %v1022_v30 }
 0x257   : > { %v935_v31 = vpop.f32.mrf.mxu2 }
 0x258   : > { %v936_v22 = vadd.f32 %v1890_v53, %v935_v31  ;;  %v1024_v23 = vpop.f32.mrf.mxu3 }
 0x25a   : > { %v1025_v24 = vadd.f32 %v1024_v23, %v936_v22 }
 0x25c   : > { %1059 = vst [vmem:[%s1896_s12 + $0xf0] sm:$0xff] %v1025_v24 }
 0x25f   : > { %v937_v25 = vpop.f32.mrf.mxu2 }
 0x260   : > { %v938_v26 = vadd.f32 %v1890_v53, %v937_v25  ;;  %v1026_v27 = vpop.f32.mrf.mxu3 }
 0x262   : > { %v1027_v28 = vadd.f32 %v1026_v27, %v938_v26 }
 0x264   : > { %1060 = vst [vmem:[%s1896_s12 + $0xf8] sm:$0xff] %v1027_v28 }
 0x265   : > { %1592 = shalt.err (!%p1589_p10)
}
 0x266   : > { %s1648_s26 = smov 128   ;;  %s1649_s29 = smov 8  }
 0x267   : > { %1375 = dma.vmem_to_hbm [thread:$0]  (%p1765_p3), %s1075_s15, 4096, %s1077_s7, %s1062_s16, %s1648_s26, %s1648_s26, %s1649_s29  }
 0x268 PF: > { %s1091_s12 = sand.u32 1, %s1627_s18   ;;  %p2036_p12 = scmp.ge.s32.totalorder %s1639_s21, 2 }
 0x269   : > { %s1092_s23 = scalar_lea.sflag [#allocation4], %s1091_s12 }
 0x26a   : > { %p1392_p13 = pnand %p2036_p12, %p1715_p6 }
 0x26c   : > { %p1393_p0 = pneg %p1392_p13 }
 0x26e   : > { %1622 = dma.done.wait (%p1393_p0), %s1092_s23, 4096  }
 0x26f   : > { %1624 = vsyncadd (%p1393_p0), %s1092_s23, 4294963200  ;;  %p20_p5 = scmp.ge.s32.totalorder %s1752_s30, 4   ;;  %s2037_s18 = smov %s1631_s19 }
 0x270   : > { %s2038_s19 = smov %s1635_s20  ;;  %s2039_s20 = smov %s1761_s9 }
 0x271   : > { %s2040_s21 = smov %s1752_s30  ;;  %22 = sbr.rel (!%p20_p5) target bundleno = 7 (0x7), region = 97 }
 0x276   :  { %1098 = vsyncpa [#allocation3], 1 }
 0x277   :  { %1100 = vsyncpa [#allocation3 + $0x1], 1 }
 0x278   :  { %1101 = vsyncpa [#allocation6], 1 }
 0x279   :  { %1102 = vsyncpa [#allocation9], 1 }
 0x27a   :  { %1103 = vsyncpa [#allocation4], 1 }
 0x27b   :  { %1105 = vsyncpa [#allocation4 + $0x1], 1 }

</bundles_post_ra>
